<compile_context>
chip_gen: v6e
topology: v6e:2x2x1
jax: 0.10.0
libtpu: 0.0.40
codegen_flags: <defaults>
</compile_context>

<pallas_src>
import jax
import jax.numpy as jnp
from jax.experimental import pallas as pl
from jax.experimental.pallas import tpu as pltpu

HIDDEN = 64
TM = 1024   # splat tile width (lanes); 512-1024 is also a good v5e setting.


def _round_up(x, m):
    return ((x + m - 1) // m) * m


def _silu(x):
    return x * jax.nn.sigmoid(x)


def _shader_kernel(h1_ref, col_ref, w1c_ref, w2_ref, b2_ref,
                   w3_ref, b3_ref, w4_ref, b4_ref, out_ref):
    """One (splat_tile, camera) grid step. Activations are (HIDDEN, TM)."""
    col = col_ref[0]                                             # (3, TM) f32

    # layer 1: precomputed camera-invariant base + per-camera color term
    h = h1_ref[...].astype(jnp.float32) + jnp.dot(
        w1c_ref[...], col, preferred_element_type=jnp.float32)  # (64, TM) f32
    h = _silu(h)

    h = jnp.dot(w2_ref[...], h.astype(jnp.bfloat16),
                preferred_element_type=jnp.float32) + b2_ref[...]
    h = _silu(h)

    h = jnp.dot(w3_ref[...], h.astype(jnp.bfloat16),
                preferred_element_type=jnp.float32) + b3_ref[...]
    h = _silu(h)

    shading = jnp.dot(w4_ref[...], h.astype(jnp.bfloat16),
                      preferred_element_type=jnp.float32) + b4_ref[...]  # (3, TM)

    # sigmoid(inverse_sigmoid(c) + s) == 1 / (1 + (1-c)/c * exp(-s))
    c = jnp.clip(col, 1e-07, 1.0 - 1e-07)
    ratio = (1.0 - c) * pl.reciprocal(c, approx=True)
    out_ref[0] = pl.reciprocal(1.0 + ratio * jnp.exp(-shading), approx=True)


@jax.jit
def learnable_shader(spatial_position, orientation, features, colors, params):
    """Pallas implementation of LearnableShader.forward.

    Args:
      spatial_position: (n_splats, 3) f32
      orientation:      (n_splats, 4) f32
      features:         (n_splats, F) f32
      colors:           (cam, n_splats, 3) f32
      params: dict with w1..w4 stored as (in, out) and b1..b4 as (1, out)

    Returns:
      (cam, n_splats, 3) f32
    """
    cam, n_splats, _ = colors.shape
    feat_dim = features.shape[-1]

    w1, b1 = params["w1"], params["b1"]
    w1_pos, w1_ori = w1[0:3], w1[3:7]
    w1_fea, w1_col = w1[7:7 + feat_dim], w1[7 + feat_dim:]

    # ---- camera-invariant part of layer 1, once per splat (hoisted) ----
    h1 = (spatial_position.astype(jnp.float32) @ w1_pos
          + orientation.astype(jnp.float32) @ w1_ori
          + features.astype(jnp.float32) @ w1_fea
          + b1)                                                  # (n, 64) f32
    h1T = h1.T.astype(jnp.bfloat16)                              # (64, n)
    colsT = jnp.transpose(colors, (0, 2, 1)).astype(jnp.float32)  # (cam, 3, n)

    tm = min(TM, _round_up(n_splats, 256))
    n_pad = _round_up(n_splats, tm)
    if n_pad != n_splats:
        pad = n_pad - n_splats
        h1T = jnp.pad(h1T, ((0, 0), (0, pad)))
        colsT = jnp.pad(colsT, ((0, 0), (0, 0), (0, pad)))

    # transposed weights (feature-major); wide matmul weights in bf16
    w1cT = w1_col.T.astype(jnp.float32)                 # (64, 3)
    w2T = params["w2"].T.astype(jnp.bfloat16)           # (64, 64)
    w3T = params["w3"].T.astype(jnp.bfloat16)           # (64, 64)
    w4T = params["w4"].T.astype(jnp.bfloat16)           # (3, 64)
    b2T = params["b2"].T.astype(jnp.float32)            # (64, 1)
    b3T = params["b3"].T.astype(jnp.float32)            # (64, 1)
    b4T = params["b4"].T.astype(jnp.float32)            # (3, 1)

    n_tiles = n_pad // tm
    full = lambda arr: pl.BlockSpec(arr.shape, lambda i, c: (0,) * arr.ndim)

    out_t = pl.pallas_call(
        _shader_kernel,
        out_shape=jax.ShapeDtypeStruct((cam, 3, n_pad), jnp.float32),
        grid_spec=pltpu.PrefetchScalarGridSpec(
            num_scalar_prefetch=0,
            # cam innermost: h1 block index is constant across it -> one DMA
            # of the big per-splat tile per splat tile, not per camera.
            grid=(n_tiles, cam),
            in_specs=[
                pl.BlockSpec((HIDDEN, tm), lambda i, c: (0, i)),     # h1T
                pl.BlockSpec((1, 3, tm), lambda i, c: (c, 0, i)),    # colorsT
                full(w1cT),
                full(w2T), full(b2T),
                full(w3T), full(b3T),
                full(w4T), full(b4T),
            ],
            out_specs=pl.BlockSpec((1, 3, tm), lambda i, c: (c, 0, i)),
        ),
        compiler_params=pltpu.CompilerParams(
            dimension_semantics=("parallel", "parallel")),
    )(h1T, colsT, w1cT, w2T, b2T, w3T, b3T, w4T, b4T)

    # lane-dense (cam, 3, n_pad) -> (cam, n_splats, 3)
    return jnp.transpose(out_t[:, :, :n_splats], (0, 2, 1))


def init_params(key, feature_dim):
    """Deterministic synthetic init matching nn.Linear shapes (weights stored
    transposed as (in, out) for row-major matmul)."""
    d_in = feature_dim + 3 + 4 + 3
    dims = [(d_in, HIDDEN), (HIDDEN, HIDDEN), (HIDDEN, HIDDEN), (HIDDEN, 3)]
    params = {}
    for idx, (din, dout) in enumerate(dims, start=1):
        key, kw, kb = jax.random.split(key, 3)
        bound = 1.0 / jnp.sqrt(din)
        params[f"w{idx}"] = jax.random.uniform(
            kw, (din, dout), jnp.float32, -bound, bound)
        params[f"b{idx}"] = jax.random.uniform(
            kb, (1, dout), jnp.float32, -bound, bound)
    return params


def _reference(spatial_position, orientation, features, colors, params):
    """Pure-JAX f32 reference matching the PyTorch module."""
    cam = colors.shape[0]
    pos = jnp.broadcast_to(spatial_position[None], (cam,) + spatial_position.shape)
    ori = jnp.broadcast_to(orientation[None], (cam,) + orientation.shape)
    fea = jnp.broadcast_to(features[None], (cam,) + features.shape)
    h = jnp.concatenate([pos, ori, fea, colors], axis=-1)
    h = _silu(h @ params["w1"] + params["b1"])
    h = _silu(h @ params["w2"] + params["b2"])
    h = _silu(h @ params["w3"] + params["b3"])
    shading = h @ params["w4"] + params["b4"]
    c = jnp.clip(colors, 1e-07, 1.0 - 1e-07)
    return jax.nn.sigmoid(jnp.log(c / (1.0 - c)) + shading)


if __name__ == "__main__":
    key = jax.random.PRNGKey(0)
    feature_dim = 32
    cam, n_splats = 2, 200   # not a multiple of the tile -> exercises padding

    key, k1, k2, k3, k4, kp = jax.random.split(key, 6)
    spatial_position = jax.random.normal(k1, (n_splats, 3), jnp.float32)
    orientation = jax.random.normal(k2, (n_splats, 4), jnp.float32)
    features = jax.random.normal(k3, (n_splats, feature_dim), jnp.float32)
    colors = jax.random.uniform(k4, (cam, n_splats, 3), jnp.float32,
                                minval=0.01, maxval=0.99)

    params = init_params(kp, feature_dim)

    out = learnable_shader(spatial_position, orientation, features, colors, params)
    out = jax.block_until_ready(out)

    ref = _reference(spatial_position, orientation, features, colors, params)
    assert out.shape == (cam, n_splats, 3)
    max_err = float(jnp.max(jnp.abs(out - ref)))
    # bf16 matmuls + approximate reciprocals -> relaxed tolerance vs f32 ref
    assert jnp.allclose(out, ref, atol=2e-2, rtol=0), max_err

    print("KERNEL_OK")
</pallas_src>

<mosaic_0001>
module attributes {stable_mosaic.version = 11 : i64} {
  func.func @_shader_kernel(%arg0: i32, %arg1: i32, %arg2: memref<64x256xbf16, #tpu.memory_space<vmem>>, %arg3: memref<1x3x256xf32, #tpu.memory_space<vmem>>, %arg4: memref<64x3xf32, #tpu.memory_space<vmem>>, %arg5: memref<64x64xbf16, #tpu.memory_space<vmem>>, %arg6: memref<64x1xf32, #tpu.memory_space<vmem>>, %arg7: memref<64x64xbf16, #tpu.memory_space<vmem>>, %arg8: memref<64x1xf32, #tpu.memory_space<vmem>>, %arg9: memref<3x64xbf16, #tpu.memory_space<vmem>>, %arg10: memref<3x1xf32, #tpu.memory_space<vmem>>, %arg11: memref<1x3x256xf32, #tpu.memory_space<vmem>>) attributes {dimension_semantics = [#tpu.dimension_semantics<parallel>, #tpu.dimension_semantics<parallel>], iteration_bounds = array<i64: 1, 2>, scalar_prefetch = 0 : i64, scratch_operands = 0 : i64, tpu.core_type = #tpu.core_type<tc>, window_params = [{transform_indices = @transform_0, window_bounds = array<i64: 64, 256>}, {transform_indices = @transform_1, window_bounds = array<i64: 1, 3, 256>}, {pipeline_mode = #tpu.pipeline_mode<synchronous>, transform_indices = @transform_2, window_bounds = array<i64: 64, 3>}, {pipeline_mode = #tpu.pipeline_mode<synchronous>, transform_indices = @transform_3, window_bounds = array<i64: 64, 64>}, {pipeline_mode = #tpu.pipeline_mode<synchronous>, transform_indices = @transform_4, window_bounds = array<i64: 64, 1>}, {pipeline_mode = #tpu.pipeline_mode<synchronous>, transform_indices = @transform_5, window_bounds = array<i64: 64, 64>}, {pipeline_mode = #tpu.pipeline_mode<synchronous>, transform_indices = @transform_6, window_bounds = array<i64: 64, 1>}, {pipeline_mode = #tpu.pipeline_mode<synchronous>, transform_indices = @transform_7, window_bounds = array<i64: 3, 64>}, {pipeline_mode = #tpu.pipeline_mode<synchronous>, transform_indices = @transform_8, window_bounds = array<i64: 3, 1>}, {transform_indices = @transform_9, window_bounds = array<i64: 1, 3, 256>}]} {
    %c0 = arith.constant 0 : index
    %c0_0 = arith.constant 0 : index
    %c0_1 = arith.constant 0 : index
    %0 = vector.load %arg3[%c0, %c0_0, %c0_1] : memref<1x3x256xf32, #tpu.memory_space<vmem>>, vector<1x3x256xf32>
    %1 = vector.shape_cast %0 : vector<1x3x256xf32> to vector<3x256xf32>
    %c0_2 = arith.constant 0 : index
    %c0_3 = arith.constant 0 : index
    %2 = vector.load %arg2[%c0_2, %c0_3] : memref<64x256xbf16, #tpu.memory_space<vmem>>, vector<64x256xbf16>
    %3 = arith.extf %2 : vector<64x256xbf16> to vector<64x256xf32>
    %c0_4 = arith.constant 0 : index
    %c0_5 = arith.constant 0 : index
    %4 = vector.load %arg4[%c0_4, %c0_5] : memref<64x3xf32, #tpu.memory_space<vmem>>, vector<64x3xf32>
    %cst = arith.constant dense<0.000000e+00> : vector<64x256xf32>
    %5 = tpu.matmul %4, %1, %cst {dimension_numbers = #tpu.dot_dimension_numbers<[1], [0], [0], [1], [0, 0, 1, 1], [], []>} : vector<64x3xf32>, vector<3x256xf32>, vector<64x256xf32> -> vector<64x256xf32>
    %6 = arith.addf %3, %5 : vector<64x256xf32>
    %7 = arith.negf %6 : vector<64x256xf32>
    %8 = math.exp %7 : vector<64x256xf32>
    %cst_6 = arith.constant 1.000000e+00 : f32
    %9 = vector.broadcast %cst_6 : f32 to vector<64x256xf32>
    %10 = arith.addf %9, %8 : vector<64x256xf32>
    %11 = arith.divf %9, %10 : vector<64x256xf32>
    %12 = arith.mulf %6, %11 : vector<64x256xf32>
    %c0_7 = arith.constant 0 : index
    %c0_8 = arith.constant 0 : index
    %13 = vector.load %arg5[%c0_7, %c0_8] : memref<64x64xbf16, #tpu.memory_space<vmem>>, vector<64x64xbf16>
    %14 = arith.truncf %12 : vector<64x256xf32> to vector<64x256xbf16>
    %cst_9 = arith.constant dense<0.000000e+00> : vector<64x256xf32>
    %15 = tpu.matmul %13, %14, %cst_9 {dimension_numbers = #tpu.dot_dimension_numbers<[1], [0], [0], [1], [0, 0, 1, 1], [], []>} : vector<64x64xbf16>, vector<64x256xbf16>, vector<64x256xf32> -> vector<64x256xf32>
    %c0_10 = arith.constant 0 : index
    %c0_11 = arith.constant 0 : index
    %16 = vector.load %arg6[%c0_10, %c0_11] : memref<64x1xf32, #tpu.memory_space<vmem>>, vector<64x1xf32>
    %17 = vector.broadcast %16 : vector<64x1xf32> to vector<64x256xf32>
    %18 = arith.addf %15, %17 : vector<64x256xf32>
    %19 = arith.negf %18 : vector<64x256xf32>
    %20 = math.exp %19 : vector<64x256xf32>
    %cst_12 = arith.constant 1.000000e+00 : f32
    %21 = vector.broadcast %cst_12 : f32 to vector<64x256xf32>
    %22 = arith.addf %21, %20 : vector<64x256xf32>
    %23 = arith.divf %21, %22 : vector<64x256xf32>
    %24 = arith.mulf %18, %23 : vector<64x256xf32>
    %c0_13 = arith.constant 0 : index
    %c0_14 = arith.constant 0 : index
    %25 = vector.load %arg7[%c0_13, %c0_14] : memref<64x64xbf16, #tpu.memory_space<vmem>>, vector<64x64xbf16>
    %26 = arith.truncf %24 : vector<64x256xf32> to vector<64x256xbf16>
    %cst_15 = arith.constant dense<0.000000e+00> : vector<64x256xf32>
    %27 = tpu.matmul %25, %26, %cst_15 {dimension_numbers = #tpu.dot_dimension_numbers<[1], [0], [0], [1], [0, 0, 1, 1], [], []>} : vector<64x64xbf16>, vector<64x256xbf16>, vector<64x256xf32> -> vector<64x256xf32>
    %c0_16 = arith.constant 0 : index
    %c0_17 = arith.constant 0 : index
    %28 = vector.load %arg8[%c0_16, %c0_17] : memref<64x1xf32, #tpu.memory_space<vmem>>, vector<64x1xf32>
    %29 = vector.broadcast %28 : vector<64x1xf32> to vector<64x256xf32>
    %30 = arith.addf %27, %29 : vector<64x256xf32>
    %31 = arith.negf %30 : vector<64x256xf32>
    %32 = math.exp %31 : vector<64x256xf32>
    %cst_18 = arith.constant 1.000000e+00 : f32
    %33 = vector.broadcast %cst_18 : f32 to vector<64x256xf32>
    %34 = arith.addf %33, %32 : vector<64x256xf32>
    %35 = arith.divf %33, %34 : vector<64x256xf32>
    %36 = arith.mulf %30, %35 : vector<64x256xf32>
    %c0_19 = arith.constant 0 : index
    %c0_20 = arith.constant 0 : index
    %37 = vector.load %arg9[%c0_19, %c0_20] : memref<3x64xbf16, #tpu.memory_space<vmem>>, vector<3x64xbf16>
    %38 = arith.truncf %36 : vector<64x256xf32> to vector<64x256xbf16>
    %cst_21 = arith.constant dense<0.000000e+00> : vector<3x256xf32>
    %39 = tpu.matmul %37, %38, %cst_21 {dimension_numbers = #tpu.dot_dimension_numbers<[1], [0], [0], [1], [0, 0, 1, 1], [], []>} : vector<3x64xbf16>, vector<64x256xbf16>, vector<3x256xf32> -> vector<3x256xf32>
    %c0_22 = arith.constant 0 : index
    %c0_23 = arith.constant 0 : index
    %40 = vector.load %arg10[%c0_22, %c0_23] : memref<3x1xf32, #tpu.memory_space<vmem>>, vector<3x1xf32>
    %41 = vector.broadcast %40 : vector<3x1xf32> to vector<3x256xf32>
    %42 = arith.addf %39, %41 : vector<3x256xf32>
    %cst_24 = arith.constant 1.000000e-07 : f32
    %cst_25 = arith.constant 0.99999988 : f32
    %43 = vector.broadcast %cst_24 : f32 to vector<3x256xf32>
    %44 = arith.maximumf %43, %1 : vector<3x256xf32>
    %45 = vector.broadcast %cst_25 : f32 to vector<3x256xf32>
    %46 = arith.minimumf %45, %44 : vector<3x256xf32>
    %cst_26 = arith.constant 1.000000e+00 : f32
    %47 = vector.broadcast %cst_26 : f32 to vector<3x256xf32>
    %48 = arith.subf %47, %46 : vector<3x256xf32>
    %49 = tpu.reciprocal %46 {approx = true} : vector<3x256xf32> -> vector<3x256xf32>
    %50 = arith.mulf %48, %49 : vector<3x256xf32>
    %cst_27 = arith.constant 0.000000e+00 : f32
    %51 = vector.broadcast %cst_27 : f32 to vector<3x256xf32>
    %52 = arith.subf %51, %42 : vector<3x256xf32>
    %53 = math.exp %52 : vector<3x256xf32>
    %54 = arith.mulf %50, %53 : vector<3x256xf32>
    %cst_28 = arith.constant 1.000000e+00 : f32
    %55 = vector.broadcast %cst_28 : f32 to vector<3x256xf32>
    %56 = arith.addf %55, %54 : vector<3x256xf32>
    %57 = tpu.reciprocal %56 {approx = true} : vector<3x256xf32> -> vector<3x256xf32>
    %c0_29 = arith.constant 0 : index
    %c0_30 = arith.constant 0 : index
    %c0_31 = arith.constant 0 : index
    %58 = vector.load %arg11[%c0_29, %c0_30, %c0_31] : memref<1x3x256xf32, #tpu.memory_space<vmem>>, vector<1x3x256xf32>
    %59 = vector.shape_cast %58 : vector<1x3x256xf32> to vector<3x256xf32>
    %60 = vector.shape_cast %57 : vector<3x256xf32> to vector<1x3x256xf32>
    tpu.vector_store %arg11[%c0_29, %c0_30, %c0_31], %60 {strides = array<i32>} : memref<1x3x256xf32, #tpu.memory_space<vmem>>, vector<1x3x256xf32>,
    return
  }
  func.func @transform_0(%arg0: i32, %arg1: i32) -> (i32, i32) {
    %c0_i32 = arith.constant 0 : i32
    %c0_i32_0 = arith.constant 0 : i32
    return %c0_i32, %arg0 : i32, i32
  }
  func.func @transform_1(%arg0: i32, %arg1: i32) -> (i32, i32, i32) {
    %c0_i32 = arith.constant 0 : i32
    %c0_i32_0 = arith.constant 0 : i32
    return %arg1, %c0_i32, %arg0 : i32, i32, i32
  }
  func.func @transform_2(%arg0: i32, %arg1: i32) -> (i32, i32) {
    %c0_i32 = arith.constant 0 : i32
    %c0_i32_0 = arith.constant 0 : i32
    %c0_i32_1 = arith.constant 0 : i32
    return %c0_i32, %c0_i32_0 : i32, i32
  }
  func.func @transform_3(%arg0: i32, %arg1: i32) -> (i32, i32) {
    %c0_i32 = arith.constant 0 : i32
    %c0_i32_0 = arith.constant 0 : i32
    %c0_i32_1 = arith.constant 0 : i32
    return %c0_i32, %c0_i32_0 : i32, i32
  }
  func.func @transform_4(%arg0: i32, %arg1: i32) -> (i32, i32) {
    %c0_i32 = arith.constant 0 : i32
    %c0_i32_0 = arith.constant 0 : i32
    %c0_i32_1 = arith.constant 0 : i32
    return %c0_i32, %c0_i32_0 : i32, i32
  }
  func.func @transform_5(%arg0: i32, %arg1: i32) -> (i32, i32) {
    %c0_i32 = arith.constant 0 : i32
    %c0_i32_0 = arith.constant 0 : i32
    %c0_i32_1 = arith.constant 0 : i32
    return %c0_i32, %c0_i32_0 : i32, i32
  }
  func.func @transform_6(%arg0: i32, %arg1: i32) -> (i32, i32) {
    %c0_i32 = arith.constant 0 : i32
    %c0_i32_0 = arith.constant 0 : i32
    %c0_i32_1 = arith.constant 0 : i32
    return %c0_i32, %c0_i32_0 : i32, i32
  }
  func.func @transform_7(%arg0: i32, %arg1: i32) -> (i32, i32) {
    %c0_i32 = arith.constant 0 : i32
    %c0_i32_0 = arith.constant 0 : i32
    %c0_i32_1 = arith.constant 0 : i32
    return %c0_i32, %c0_i32_0 : i32, i32
  }
  func.func @transform_8(%arg0: i32, %arg1: i32) -> (i32, i32) {
    %c0_i32 = arith.constant 0 : i32
    %c0_i32_0 = arith.constant 0 : i32
    %c0_i32_1 = arith.constant 0 : i32
    return %c0_i32, %c0_i32_0 : i32, i32
  }
  func.func @transform_9(%arg0: i32, %arg1: i32) -> (i32, i32, i32) {
    %c0_i32 = arith.constant 0 : i32
    %c0_i32_0 = arith.constant 0 : i32
    return %arg1, %c0_i32, %arg0 : i32, i32, i32
  }
}

</mosaic_0001>

<bundles_post_ra>
// kernel: learnable_shader.1
= control target key start
LH: loop header
LB: loop body
LE: loop exit
PB: predicated region body
PF: predicated region fallthrough
CT: control target
= control target key end

     0   :  { %s1849_s30 = smov 0   ;;  %s1851_s10 = smov 0   ;;  %s2242_s0 = inlined_call_operand.vmem [shape: bf16[64,256], index: 0, kind: input, shape index: {}]   ;;  %s2243_s1 = inlined_call_operand.vmem [shape: f32[2,3,256], index: 1, kind: input, shape index: {}]   ;;  %s2244_s2 = inlined_call_operand.vmem [shape: f32[64,3], index: 2, kind: input, shape index: {}]   ;;  %s2245_s3 = inlined_call_operand.vmem [shape: bf16[64,64], index: 3, kind: input, shape index: {}]   ;;  %s2246_s4 = inlined_call_operand.vmem [shape: f32[64,1], index: 4, kind: input, shape index: {}]   ;;  %s2247_s5 = inlined_call_operand.vmem [shape: bf16[64,64], index: 5, kind: input, shape index: {}]   ;;  %s2248_s6 = inlined_call_operand.vmem [shape: f32[64,1], index: 6, kind: input, shape index: {}]   ;;  %s2249_s7 = inlined_call_operand.vmem [shape: bf16[3,64], index: 7, kind: input, shape index: {}]   ;;  %s2250_s8 = inlined_call_operand.vmem [shape: f32[3,1], index: 8, kind: input, shape index: {}]   ;;  %s2251_s9 = inlined_call_operand.vmem [shape: f32[2,3,256], index: 9, kind: output, shape index: {}]  }
   0x1   :  { %s1853_s11 = smov 0  }
   0x2 LB: > { %s28_s12 = sadd.s32 1, %s1791_s10  ;;  %p1449_p0 = scmp.ge.s32.totalorder %s1795_s11, 1  ;;  %s1795_s11 = sphi %s1853_s11, %s19_s11   ;;  %s1791_s10 = sphi %s1851_s10, %s2253_s10   ;;  %s1787_s30 = sphi %s1849_s30, %s2252_s30  }
   0x3   : > { %p29_p1 = scmp.ge.s32.totalorder %s28_s12, 2  ;;  %p319_p2 = scmp.lt.s32.totalorder %s1795_s11, 3 }
   0x5   : > { %s2255_s12 = smov (%p29_p1, %s28_s12), 0  ;;  %p320_p3 = pnand %p1449_p0, %p319_p2 }
   0x6   : > { %p375_p4 = scmp.lt.s32.totalorder (!%p320_p3), %s1787_s30, 1 }
   0x7   : > { %323 = sbr.rel (%p320_p3) target bundleno = 1072 (0x430), region = 56 }
   0xc   : > { %v1797_v0 = vmov 0.0   ;;  %s2257_s30 = smov (!%p375_p4, %s1787_s30), 1  ;;  %vm455_vm0 = vcmask 1042432   ;;  %v420_v2 = vld [vmem:[%s2244_s2] sm:$0xff]  ;;  %vm430_vm1 = vcmask 23552   ;;  %v421_v5 = vld [vmem:[%s2244_s2 + $0x8] sm:$0xff] }
   0xd   : > { %524 = vmatprep.mubr.f32.mxu0 %v1797_v0  ;;  %548 = vmatprep.mubr.f32.mxu1 %v1797_v0  ;;  %s1531_s13 = sshll.u32 %s2257_s30, 3  ;;  %v424_v4 = vld [vmem:[%s2244_s2 + $0x20] sm:$0xff]  ;;  %v425_v6 = vld [vmem:[%s2244_s2 + $0x28] sm:$0xff]  ;;  %v422_v7 = vld [vmem:[%s2244_s2 + $0x10] sm:$0xff]  ;;  %v1798_v11 = vmov 0   ;;  %vm785_vm2 = vcmask 523264  }
   0xe   : > { %s1875_s16 = scalar_lea.vmem %s2243_s1, %s1531_s13  ;;  %v426_v8 = vld [vmem:[%s2244_s2 + $0x30] sm:$0xff]  ;;  %v423_v9 = vld [vmem:[%s2244_s2 + $0x18] sm:$0xff]  ;;  %1561 = vset.pattern.permute.xlu0 %v1798_v11  ;;  %1562 = vset.pattern.permute.xlu1 %v1798_v11  ;;  %v721_v13 = vld [vmem:[%s2246_s4 + $0x20] sm:$0xff]  ;;  %s392_s27 = scalar_lea.vmem %s2251_s9, %s1531_s13 }
   0xf   : > { %v395_v1 = vld [vmem:[%s1875_s16] sm:$0x77]  ;;  %v427_v10 = vld [vmem:[%s2244_s2 + $0x38] sm:$0xff]  ;;  %v723_v12 = vld [vmem:[%s2246_s4 + $0x30] sm:$0xff]  ;;  %747 = vperm.xlu1 %1562, %v721_v13  }
  0x10   : > { %v429_v3 = vcombine.high %v395_v1, %v395_v1  ;;  %757 = vperm.xlu0 %1561, %v723_v12   ;;  %v724_v14 = vld [vmem:[%s2246_s4 + $0x38] sm:$0xff]  ;;  %v722_v15 = vld [vmem:[%s2246_s4 + $0x28] sm:$0xff]  ;;  %v719_v16 = vld [vmem:[%s2246_s4 + $0x10] sm:$0xff] }
  0x11   : > { %v720_v17 = vld [vmem:[%s2246_s4 + $0x18] sm:$0xff]  ;;  %v717_v18 = vld [vmem:[%s2246_s4] sm:$0xff]  ;;  %v718_v19 = vld [vmem:[%s2246_s4 + $0x8] sm:$0xff] }
  0x12   : > { %1454 = vmatprep.subr.msk.mxu0 %vm455_vm0, %v429_v3  ;;  %1533 = vmatprep.subr.msk.mxu1 %vm455_vm0, %v429_v3  ;;  %v1005_v20 = vld [vmem:[%s2248_s6 + $0x30] sm:$0xff]  ;;  %v1006_v21 = vld [vmem:[%s2248_s6 + $0x38] sm:$0xff]  ;;  %v1003_v22 = vld [vmem:[%s2248_s6 + $0x20] sm:$0xff] }
  0x13   : > { %1455 = vmatpush1.msk.msra.mxu0 %vm455_vm0, %v395_v1  ;;  %1534 = vmatpush1.msk.msra.mxu1 %vm455_vm0, %v395_v1  ;;  %v1004_v23 = vld [vmem:[%s2248_s6 + $0x28] sm:$0xff]  ;;  %v1001_v24 = vld [vmem:[%s2248_s6 + $0x10] sm:$0xff]  ;;  %v1002_v25 = vld [vmem:[%s2248_s6 + $0x18] sm:$0xff] }
  0x14   : > { %1456 = vmatmul.mubr.msk.f32.vlgmr.msra.gmra.mxu0 %vm430_vm1, %v420_v2  ;;  %1460 = vmatmul.mubr.msk.f32.vlgmr.msra.gmra.mxu1 %vm430_vm1, %v424_v4  ;;  %v999_v26 = vld [vmem:[%s2248_s6] sm:$0xff]  ;;  %v1000_v27 = vld [vmem:[%s2248_s6 + $0x8] sm:$0xff]  ;;  %v402_v40 = vld [vmem:[%s2242_s0 + $0x30] sm:$0xff] }
  0x15   : > { %530 = vmatprep.mubr.f32.mxu0 %v1797_v0  ;;  %554 = vmatprep.mubr.f32.mxu1 %v1797_v0  ;;  %v1273_v28 = vld [vmem:[%s2250_s8] sm:$0x7]  ;;  %v401_v31 = vld [vmem:[%s2242_s0 + $0x28] sm:$0xff]  ;;  %v398_v47 = vld [vmem:[%s2242_s0 + $0x10] sm:$0xff]  ;;  %v416_v48 = vunpack.c.l.bf16 %v402_v40  ;;  %v417_v54 = vunpack.c.h.bf16 %v402_v40 }
  0x16   : > { %762 = vperm.xlu0 %1561, %v724_v14   ;;  %752 = vperm.xlu1 %1562, %v722_v15   ;;  %v400_v29 = vld [vmem:[%s2242_s0 + $0x20] sm:$0xff]  ;;  %v414_v37 = vunpack.c.l.bf16 %v401_v31  ;;  %v415_v39 = vunpack.c.h.bf16 %v401_v31  ;;  %v399_v49 = vld [vmem:[%s2242_s0 + $0x18] sm:$0xff]  ;;  %v397_v51 = vld [vmem:[%s2242_s0 + $0x8] sm:$0xff]  ;;  %v409_v53 = vunpack.c.h.bf16 %v398_v47  ;;  %v408_v61 = vunpack.c.l.bf16 %v398_v47 }
  0x17   : > { %v413_v30 = vunpack.c.h.bf16 %v400_v29  ;;  %v412_v34 = vunpack.c.l.bf16 %v400_v29  ;;  %v403_v55 = vld [vmem:[%s2242_s0 + $0x38] sm:$0xff]  ;;  %v407_v56 = vunpack.c.h.bf16 %v397_v51  ;;  %v410_v62 = vunpack.c.l.bf16 %v399_v49 }
  0x18   : > { %1457 = vmatmul.mubr.msk.f32.gmra.mxu0 %vm430_vm1, %v421_v5  ;;  %1461 = vmatmul.mubr.msk.f32.gmra.mxu1 %vm430_vm1, %v425_v6  ;;  %v418_v3 = vunpack.c.l.bf16 %v403_v55  ;;  %v411_v4 = vunpack.c.h.bf16 %v399_v49  ;;  %v396_v5 = vld [vmem:[%s2242_s0] sm:$0xff] }
  0x19   : > { %536 = vmatprep.mubr.f32.mxu0 %v1797_v0  ;;  %560 = vmatprep.mubr.f32.mxu1 %v1797_v0 }
  0x1a   : > { %737 = vperm.xlu0 %1561, %v719_v16   ;;  %742 = vperm.xlu1 %1562, %v720_v17  }
  0x1c   : > { %1458 = vmatmul.mubr.msk.f32.gmra.mxu0 %vm430_vm1, %v422_v7  ;;  %1462 = vmatmul.mubr.msk.f32.gmra.mxu1 %vm430_vm1, %v426_v8  ;;  %v419_v8 = vunpack.c.h.bf16 %v403_v55 }
  0x1d   : > { %542 = vmatprep.mubr.f32.mxu0 %v1797_v0  ;;  %566 = vmatprep.mubr.f32.mxu1 %v1797_v0 }
  0x1e   : > { %727 = vperm.xlu0 %1561, %v717_v18   ;;  %732 = vperm.xlu1 %1562, %v718_v19   ;;  %v404_v18 = vunpack.c.l.bf16 %v396_v5 }
  0x20   : > { %1459 = vmatmul.mubr.msk.f32.gmra.mxu0 %vm430_vm1, %v423_v9  ;;  %1463 = vmatmul.mubr.msk.f32.gmra.mxu1 %vm430_vm1, %v427_v10  ;;  %v405_v9 = vunpack.c.h.bf16 %v396_v5  ;;  %v406_v10 = vunpack.c.l.bf16 %v397_v51 }
  0x21   : > { %830 = vmatprep.mubr.bf16.mxu1 %v1798_v11  ;;  %1111 = vmatprep.mubr.bf16.mxu0 %v1798_v11 }
  0x22   : > { %1039 = vperm.xlu0 %1561, %v1005_v20   ;;  %1044 = vperm.xlu1 %1562, %v1006_v21  }
  0x26   : > { %1029 = vperm.xlu0 %1561, %v1003_v22   ;;  %1034 = vperm.xlu1 %1562, %v1004_v23  }
  0x2a   : > { %1019 = vperm.xlu0 %1561, %v1001_v24   ;;  %1024 = vperm.xlu1 %1562, %v1002_v25  }
  0x2e   : > { %1009 = vperm.xlu0 %1561, %v999_v26   ;;  %1014 = vperm.xlu1 %1562, %v1000_v27  }
  0x32   : > { %1276 = vperm.xlu0 %1561, %v1273_v28  }
  0xd4   : > { %v1971_v32 = vpop.f32.mrf.mxu0  ;;  %v550_v33 = vpop.f32.mrf.mxu1 }
  0xd5   : > { %v1978_v43 = vadd.f32 %v550_v33, %v412_v34  ;;  %v2034_v34 = vadd.f32 %v1971_v32, %v404_v18 }
  0xd6   : > { %v528_v35 = vpop.f32.mrf.mxu0  ;;  %v552_v36 = vpop.f32.mrf.mxu1 }
  0xd7   : > { %v1973_v38 = vadd.f32 %v552_v36, %v413_v30  ;;  %v1472_v59 = vmul.f32 -1.442695, %v1978_v43  ;;  %v2024_v26 = vadd.f32 %v528_v35, %v405_v9 }
  0xd8   : > { %v532_v41 = vpop.f32.mrf.mxu0  ;;  %v556_v42 = vpop.f32.mrf.mxu1 }
  0xd9   : > { %v1980_v44 = vadd.f32 %v556_v42, %v414_v37  ;;  %v1473_v50 = vmul.f32 -1.442695, %v1973_v38  ;;  %v2026_v27 = vadd.f32 %v532_v41, %v406_v10  ;;  %v1465_v36 = vmul.f32 -1.442695, %v2024_v26 }
  0xda   : > { %v534_v45 = vpop.f32.mrf.mxu0  ;;  %v558_v46 = vpop.f32.mrf.mxu1 }
  0xdb   : > { %v1992_v52 = vadd.f32 %v558_v46, %v415_v39  ;;  %v1474_v63 = vmul.f32 -1.442695, %v1980_v44  ;;  %1572 = vpow2.f32 %v1473_v50  ;;  %v2014_v19 = vadd.f32 %v534_v45, %v407_v56 }
  0xdc   : > { %v538_v57 = vpop.f32.mrf.mxu0  ;;  %v562_v58 = vpop.f32.mrf.mxu1  ;;  %v1466_v37 = vmul.f32 -1.442695, %v2026_v27  ;;  %v1464_v39 = vmul.f32 -1.442695, %v2034_v34 }
  0xdd   : > { %v1475_v60 = vmul.f32 -1.442695, %v1992_v52  ;;  %v2000_v0 = vadd.f32 %v562_v58, %v416_v48  ;;  %v2018_v23 = vadd.f32 %v538_v57, %v408_v61  ;;  %v1467_v33 = vmul.f32 -1.442695, %v2014_v19 }
  0xde   : > { %v540_v1 = vpop.f32.mrf.mxu0  ;;  %v564_v2 = vpop.f32.mrf.mxu1 }
  0xdf   : > { %v2005_v6 = vadd.f32 %v540_v1, %v409_v53  ;;  %v2007_v7 = vadd.f32 %v564_v2, %v417_v54  ;;  %1574 = vpow2.f32 %v1475_v60  ;;  %v1476_v12 = vmul.f32 -1.442695, %v2000_v0 }
  0xe0   : > { %v544_v13 = vpop.f32.mrf.mxu0  ;;  %v568_v14 = vpop.f32.mrf.mxu1  ;;  %1576 = vpow2.f32 %v1472_v59  ;;  %v1468_v35 = vmul.f32 -1.442695, %v2018_v23 }
  0xe1   : > { %v1469_v15 = vmul.f32 -1.442695, %v2005_v6  ;;  %v1477_v16 = vmul.f32 -1.442695, %v2007_v7  ;;  %v2012_v17 = vadd.f32 %v544_v13, %v410_v62  ;;  %1578 = vpow2.f32 %v1474_v63 }
  0xe2   : > { %v2016_v20 = vadd.f32 %v568_v14, %v418_v3  ;;  %v546_v21 = vpop.f32.mrf.mxu0  ;;  %v570_v22 = vpop.f32.mrf.mxu1  ;;  %1580 = vpow2.f32 %v1476_v12 }
  0xe3   : > { %v2020_v24 = vadd.f32 %v546_v21, %v411_v4  ;;  %v2022_v25 = vadd.f32 %v570_v22, %v419_v8  ;;  %1582 = vpow2.f32 %v1477_v16  ;;  %v1470_v29 = vmul.f32 -1.442695, %v2012_v17 }
  0xe4   : > { %v1478_v28 = vmul.f32 -1.442695, %v2016_v20  ;;  %1584 = vpow2.f32 %v1469_v15 }
  0xe5   : > { %v1471_v30 = vmul.f32 -1.442695, %v2020_v24  ;;  %v1479_v31 = vmul.f32 -1.442695, %v2022_v25 }
  0xe6   : > { %1586 = vpow2.f32 %v1478_v28 }
  0xe7   : > { %1588 = vpow2.f32 %v1471_v30 }
  0xe8   : > { %1590 = vpow2.f32 %v1479_v31  ;;  %v1573_v40 = vpop.eup %1572 }
  0xe9   : > { %1592 = vpow2.f32 %v1470_v29  ;;  %v646_v45 = vadd.f32 1.0, %v1573_v40 }
  0xea   : > { %1594 = vpow2.f32 %v1467_v33 }
  0xeb   : > { %1596 = vpow2.f32 %v1468_v35 }
  0xec   : > { %1598 = vpow2.f32 %v1465_v36  ;;  %v1575_v41 = vpop.eup %1574 }
  0xed   : > { %1600 = vpow2.f32 %v1466_v37  ;;  %v1577_v42 = vpop.eup %1576  ;;  %v648_v47 = vadd.f32 1.0, %v1575_v41 }
  0xee   : > { %v1579_v32 = vpop.eup %1578  ;;  %1602 = vpow2.f32 %v1464_v39  ;;  %v645_v62 = vadd.f32 1.0, %v1577_v42 }
  0xef   : > { %v1581_v46 = vpop.eup %1580  ;;  %1604 = vrcp.f32 %v646_v45  ;;  %v647_v57 = vadd.f32 1.0, %v1579_v32 }
  0xf0   : > { %v1583_v48 = vpop.eup %1582  ;;  %v649_v53 = vadd.f32 1.0, %v1581_v46  ;;  %1606 = vrcp.f32 %v648_v47 }
  0xf1   : > { %v1585_v49 = vpop.eup %1584  ;;  %v650_v50 = vadd.f32 1.0, %v1583_v48 }
  0xf2   : > { %v642_v1 = vadd.f32 1.0, %v1585_v49 }
  0xf3   : > { %v1587_v51 = vpop.eup %1586  ;;  %1608 = vrcp.f32 %v650_v50 }
  0xf4   : > { %v1589_v54 = vpop.eup %1588  ;;  %v651_v55 = vadd.f32 1.0, %v1587_v51 }
  0xf5   : > { %v1591_v56 = vpop.eup %1590  ;;  %v644_v59 = vadd.f32 1.0, %v1589_v54 }
  0xf6   : > { %v1593_v58 = vpop.eup %1592  ;;  %1610 = vrcp.f32 %v651_v55  ;;  %v652_v60 = vadd.f32 1.0, %v1591_v56 }
  0xf7   : > { %v1595_v61 = vpop.eup %1594  ;;  %1612 = vrcp.f32 %v649_v53  ;;  %v643_v3 = vadd.f32 1.0, %v1593_v58 }
  0xf8   : > { %v1597_v63 = vpop.eup %1596  ;;  %1614 = vrcp.f32 %v652_v60  ;;  %v640_v5 = vadd.f32 1.0, %v1595_v61  ;;  %v748_v61 = vpop.permute.xlu1 %747 }
  0xf9   : > { %v1599_v2 = vpop.eup %1598  ;;  %1616 = vrcp.f32 %v647_v57  ;;  %v641_v8 = vadd.f32 1.0, %v1597_v63 }
  0xfa   : > { %v1601_v4 = vpop.eup %1600  ;;  %1618 = vrcp.f32 %v644_v59  ;;  %v638_v10 = vadd.f32 1.0, %v1599_v2  ;;  %v758_v59 = vpop.permute.xlu0 %757 }
  0xfb   : > { %1620 = vrcp.f32 %v645_v62  ;;  %v1603_v9 = vpop.eup %1602  ;;  %v639_v12 = vadd.f32 1.0, %v1601_v4 }
  0xfc   : > { %1622 = vrcp.f32 %v642_v1  ;;  %v637_v13 = vadd.f32 1.0, %v1603_v9  ;;  %v1605_v14 = vpop.eup %1604 }
  0xfd   : > { %1624 = vrcp.f32 %v643_v3  ;;  %v1607_v15 = vpop.eup %1606  ;;  %v694_v39 = vmul.f32 %v1605_v14, %v1973_v38  ;;  %v753_v3 = vpop.permute.xlu1 %752 }
  0xfe   : > { %1626 = vrcp.f32 %v640_v5  ;;  %v696_v30 = vmul.f32 %v1607_v15, %v1992_v52  ;;  %v763_v1 = vpop.permute.xlu0 %762 }
  0xff   : > { %1628 = vrcp.f32 %v641_v8 }
 0x100   : > { %1630 = vrcp.f32 %v638_v10  ;;  %v1609_v16 = vpop.eup %1608  ;;  %v714_v52 = vpack.c.bf16 %v696_v30, %v694_v39 }
 0x101   : > { %1632 = vrcp.f32 %v639_v12  ;;  %v698_v31 = vmul.f32 %v1609_v16, %v2007_v7  ;;  %v743_v12 = vpop.permute.xlu1 %742 }
 0x102   : > { %1634 = vrcp.f32 %v637_v13  ;;  %v738_v9 = vpop.permute.xlu0 %737 }
 0x103   : > { %v1611_v18 = vpop.eup %1610 }
 0x104   : > { %v1613_v21 = vpop.eup %1612  ;;  %v699_v28 = vmul.f32 %v1611_v18, %v2016_v20 }
 0x105   : > { %v1615_v22 = vpop.eup %1614  ;;  %v697_v36 = vmul.f32 %v1613_v21, %v2000_v0 }
 0x106   : > { %v1617_v29 = vpop.eup %1616  ;;  %v700_v33 = vmul.f32 %v1615_v22, %v2022_v25 }
 0x107   : > { %v1619_v35 = vpop.eup %1618  ;;  %v695_v42 = vmul.f32 %v1617_v29, %v1980_v44  ;;  %v715_v32 = vpack.c.bf16 %v699_v28, %v697_v36 }
 0x108   : > { %v1621_v37 = vpop.eup %1620  ;;  %v716_v40 = vpack.c.bf16 %v700_v33, %v698_v31  ;;  %v692_v20 = vmul.f32 %v1619_v35, %v2020_v24 }
 0x109   : > { %v1623_v41 = vpop.eup %1622  ;;  %v693_v7 = vmul.f32 %v1621_v37, %v1978_v43 }
 0x10a   : > { %v1625_v45 = vpop.eup %1624  ;;  %806 = vmatprep.subr.bf16.mxu1 %v716_v40  ;;  %v690_v0 = vmul.f32 %v1623_v41, %v2005_v6  ;;  %v733_v41 = vpop.permute.xlu1 %732 }
 0x10b   : > { %v1627_v46 = vpop.eup %1626  ;;  %807 = vmatpush1.bf16.msra.mxu1 %v715_v32  ;;  %v713_v38 = vpack.c.bf16 %v695_v42, %v693_v7  ;;  %v691_v48 = vmul.f32 %v1625_v45, %v2012_v17  ;;  %v728_v7 = vpop.permute.xlu0 %727 }
 0x10c   : > { %v1629_v25 = vpop.eup %1628  ;;  %808 = vmatprep.subr.bf16.mxu1 %v714_v52  ;;  %v688_v44 = vmul.f32 %v1627_v46, %v2014_v19  ;;  %v712_v50 = vpack.c.bf16 %v692_v20, %v690_v0  ;;  %v1564_v19 = vld [vmem:[%s2245_s3] sm:$0xff]  }
 0x10d   : > { %v1631_v47 = vpop.eup %1630  ;;  %v689_v24 = vmul.f32 %v1629_v25, %v2018_v23  ;;  %v1565_v23 = vld [vmem:[%s2245_s3 + $0x8] sm:$0xff]  }
 0x10e   : > { %v1633_v49 = vpop.eup %1632  ;;  %v686_v53 = vmul.f32 %v1631_v47, %v2024_v26  ;;  %v1566_v26 = vld [vmem:[%s2245_s3 + $0x10] sm:$0xff]  }
 0x10f   : > { %809 = vmatpush1.bf16.msra.mxu1 %v713_v38  ;;  %v1635_v51 = vpop.eup %1634  ;;  %v687_v43 = vmul.f32 %v1633_v49, %v2026_v27  ;;  %v711_v54 = vpack.c.bf16 %v691_v48, %v689_v24  ;;  %v1567_v27 = vld [vmem:[%s2245_s3 + $0x18] sm:$0xff]  }
 0x110   : > { %810 = vmatprep.subr.bf16.mxu1 %v712_v50  ;;  %v710_v6 = vpack.c.bf16 %v688_v44, %v686_v53  ;;  %v685_v55 = vmul.f32 %v1635_v51, %v2034_v34 }
 0x112   : > { %v709_v17 = vpack.c.bf16 %v687_v43, %v685_v55 }
 0x113   : > { %811 = vmatpush1.bf16.msra.mxu1 %v711_v54 }
 0x114   : > { %812 = vmatprep.subr.bf16.mxu1 %v710_v6 }
 0x117   : > { %813 = vmatpush1.bf16.msra.mxu1 %v709_v17 }
 0x11a   : > { %1484 = vmatmul.mubr.msk.bf16.vlgmr.msra.gmra.mxu1 %vm785_vm2, %v1564_v19 }
 0x11b   : > { %840 = vmatprep.mubr.bf16.mxu1 %v1798_v11 }
 0x122   : > { %1485 = vmatmul.mubr.msk.bf16.gmra.mxu1 %vm785_vm2, %v1565_v23 }
 0x123   : > { %850 = vmatprep.mubr.bf16.mxu1 %v1798_v11 }
 0x12a   : > { %1486 = vmatmul.mubr.msk.bf16.gmra.mxu1 %vm785_vm2, %v1566_v26 }
 0x12b   : > { %860 = vmatprep.mubr.bf16.mxu1 %v1798_v11 }
 0x132   : > { %1487 = vmatmul.mubr.msk.bf16.gmra.mxu1 %vm785_vm2, %v1567_v27 }
 0x133   : > { %1314 = vmatprep.mubr.bf16.mxu1 %v1798_v11 }
 0x1da   : > { %v832_v34 = vpop.f32.mrf.mxu1 }
 0x1db   : > { %v2118_v24 = vadd.f32 %v832_v34, %v728_v7 }
 0x1dc   : > { %v834_v56 = vpop.f32.mrf.mxu1 }
 0x1dd   : > { %v2111_v38 = vadd.f32 %v834_v56, %v728_v7  ;;  %v1488_v54 = vmul.f32 -1.442695, %v2118_v24 }
 0x1de   : > { %v836_v57 = vpop.f32.mrf.mxu1 }
 0x1df   : > { %v2113_v48 = vadd.f32 %v836_v57, %v733_v41  ;;  %v1489_v53 = vmul.f32 -1.442695, %v2111_v38 }
 0x1e0   : > { %v838_v58 = vpop.f32.mrf.mxu1 }
 0x1e1   : > { %v2103_v20 = vadd.f32 %v838_v58, %v733_v41  ;;  %v1490_v43 = vmul.f32 -1.442695, %v2113_v48 }
 0x1e2   : > { %v842_v60 = vpop.f32.mrf.mxu1 }
 0x1e3   : > { %v2105_v52 = vadd.f32 %v842_v60, %v738_v9  ;;  %v1491_v50 = vmul.f32 -1.442695, %v2103_v20 }
 0x1e4   : > { %v844_v62 = vpop.f32.mrf.mxu1 }
 0x1e5   : > { %v2078_v13 = vadd.f32 %v844_v62, %v738_v9  ;;  %v1492_v51 = vmul.f32 -1.442695, %v2105_v52 }
 0x1e6   : > { %v846_v63 = vpop.f32.mrf.mxu1 }
 0x1e7   : > { %v1493_v22 = vmul.f32 -1.442695, %v2078_v13  ;;  %v2097_v39 = vadd.f32 %v846_v63, %v743_v12 }
 0x1e8   : > { %v848_v2 = vpop.f32.mrf.mxu1 }
 0x1e9   : > { %v2080_v14 = vadd.f32 %v848_v2, %v743_v12  ;;  %v1494_v49 = vmul.f32 -1.442695, %v2097_v39 }
 0x1ea   : > { %v852_v4 = vpop.f32.mrf.mxu1 }
 0x1eb   : > { %v1495_v31 = vmul.f32 -1.442695, %v2080_v14  ;;  %v2092_v35 = vadd.f32 %v852_v4, %v748_v61 }
 0x1ec   : > { %v854_v5 = vpop.f32.mrf.mxu1 }
 0x1ed   : > { %v2076_v8 = vadd.f32 %v854_v5, %v748_v61  ;;  %v1496_v25 = vmul.f32 -1.442695, %v2092_v35 }
 0x1ee   : > { %v856_v10 = vpop.f32.mrf.mxu1 }
 0x1ef   : > { %v1497_v16 = vmul.f32 -1.442695, %v2076_v8  ;;  %v2086_v28 = vadd.f32 %v856_v10, %v753_v3 }
 0x1f0   : > { %v858_v15 = vpop.f32.mrf.mxu1 }
 0x1f1   : > { %v2083_v18 = vadd.f32 %v858_v15, %v753_v3  ;;  %1636 = vpow2.f32 %v1497_v16  ;;  %v1498_v42 = vmul.f32 -1.442695, %v2086_v28 }
 0x1f2   : > { %v862_v21 = vpop.f32.mrf.mxu1 }
 0x1f3   : > { %v1499_v29 = vmul.f32 -1.442695, %v2083_v18  ;;  %v2089_v30 = vadd.f32 %v862_v21, %v758_v59 }
 0x1f4   : > { %v864_v33 = vpop.f32.mrf.mxu1 }
 0x1f5   : > { %v1500_v36 = vmul.f32 -1.442695, %v2089_v30  ;;  %v2095_v37 = vadd.f32 %v864_v33, %v758_v59  ;;  %1638 = vpow2.f32 %v1499_v29 }
 0x1f6   : > { %v866_v40 = vpop.f32.mrf.mxu1  ;;  %1640 = vpow2.f32 %v1493_v22 }
 0x1f7   : > { %v1501_v32 = vmul.f32 -1.442695, %v2095_v37  ;;  %v2101_v45 = vadd.f32 %v866_v40, %v763_v1  ;;  %1642 = vpow2.f32 %v1495_v31 }
 0x1f8   : > { %v868_v46 = vpop.f32.mrf.mxu1  ;;  %1644 = vpow2.f32 %v1500_v36 }
 0x1f9   : > { %v1502_v0 = vmul.f32 -1.442695, %v2101_v45  ;;  %v2109_v47 = vadd.f32 %v868_v46, %v763_v1  ;;  %1646 = vpow2.f32 %v1501_v32 }
 0x1fa   : > { %1648 = vpow2.f32 %v1498_v42 }
 0x1fb   : > { %v1503_v44 = vmul.f32 -1.442695, %v2109_v47  ;;  %1650 = vpow2.f32 %v1502_v0 }
 0x1fc   : > { %1652 = vpow2.f32 %v1496_v25 }
 0x1fd   : > { %1654 = vpow2.f32 %v1503_v44 }
 0x1fe   : > { %1656 = vpow2.f32 %v1494_v49  ;;  %v1637_v6 = vpop.eup %1636 }
 0x1ff   : > { %1658 = vpow2.f32 %v1491_v50  ;;  %v928_v23 = vadd.f32 1.0, %v1637_v6 }
 0x200   : > { %1660 = vpow2.f32 %v1492_v51 }
 0x201   : > { %1662 = vpow2.f32 %v1489_v53 }
 0x202   : > { %v1639_v55 = vpop.eup %1638  ;;  %1664 = vpow2.f32 %v1490_v43 }
 0x203   : > { %v1641_v17 = vpop.eup %1640  ;;  %1666 = vpow2.f32 %v1488_v54  ;;  %v930_v27 = vadd.f32 1.0, %v1639_v55 }
 0x204   : > { %v1643_v19 = vpop.eup %1642  ;;  %1668 = vrcp.f32 %v928_v23  ;;  %v924_v10 = vadd.f32 1.0, %v1641_v17 }
 0x205   : > { %v1645_v26 = vpop.eup %1644  ;;  %1670 = vrcp.f32 %v930_v27  ;;  %v926_v2 = vadd.f32 1.0, %v1643_v19 }
 0x206   : > { %v1647_v34 = vpop.eup %1646  ;;  %v931_v59 = vadd.f32 1.0, %v1645_v26 }
 0x207   : > { %v1649_v56 = vpop.eup %1648  ;;  %v932_v57 = vadd.f32 1.0, %v1647_v34 }
 0x208   : > { %v1651_v58 = vpop.eup %1650  ;;  %v929_v63 = vadd.f32 1.0, %v1649_v56 }
 0x209   : > { %v1653_v60 = vpop.eup %1652  ;;  %v933_v61 = vadd.f32 1.0, %v1651_v58  ;;  %1672 = vrcp.f32 %v932_v57 }
 0x20a   : > { %v1655_v62 = vpop.eup %1654  ;;  %v927_v5 = vadd.f32 1.0, %v1653_v60 }
 0x20b   : > { %v1657_v1 = vpop.eup %1656  ;;  %1674 = vrcp.f32 %v933_v61  ;;  %v934_v3 = vadd.f32 1.0, %v1655_v62 }
 0x20c   : > { %v1659_v4 = vpop.eup %1658  ;;  %1676 = vrcp.f32 %v931_v59  ;;  %v925_v15 = vadd.f32 1.0, %v1657_v1 }
 0x20d   : > { %v1661_v9 = vpop.eup %1660  ;;  %1678 = vrcp.f32 %v934_v3  ;;  %v922_v21 = vadd.f32 1.0, %v1659_v4  ;;  %v1045_v4 = vpop.permute.xlu1 %1044 }
 0x20e   : > { %v1663_v12 = vpop.eup %1662  ;;  %1680 = vrcp.f32 %v929_v63  ;;  %v923_v22 = vadd.f32 1.0, %v1661_v9 }
 0x20f   : > { %v1665_v16 = vpop.eup %1664  ;;  %1682 = vrcp.f32 %v926_v2  ;;  %v920_v31 = vadd.f32 1.0, %v1663_v12  ;;  %v1040_v2 = vpop.permute.xlu0 %1039 }
 0x210   : > { %1684 = vrcp.f32 %v927_v5  ;;  %v1667_v29 = vpop.eup %1666  ;;  %v921_v33 = vadd.f32 1.0, %v1665_v16 }
 0x211   : > { %1686 = vrcp.f32 %v924_v10  ;;  %v919_v36 = vadd.f32 1.0, %v1667_v29  ;;  %v1669_v40 = vpop.eup %1668 }
 0x212   : > { %1688 = vrcp.f32 %v925_v15  ;;  %v1671_v41 = vpop.eup %1670  ;;  %v976_v54 = vmul.f32 %v1669_v40, %v2076_v8  ;;  %v1035_v15 = vpop.permute.xlu1 %1034 }
 0x213   : > { %1690 = vrcp.f32 %v922_v21  ;;  %v978_v49 = vmul.f32 %v1671_v41, %v2083_v18  ;;  %v1030_v10 = vpop.permute.xlu0 %1029 }
 0x214   : > { %1692 = vrcp.f32 %v923_v22 }
 0x215   : > { %1694 = vrcp.f32 %v920_v31  ;;  %v996_v18 = vpack.c.bf16 %v978_v49, %v976_v54 }
 0x216   : > { %1696 = vrcp.f32 %v921_v33  ;;  %v1673_v42 = vpop.eup %1672  ;;  %v1025_v31 = vpop.permute.xlu1 %1024 }
 0x217   : > { %1698 = vrcp.f32 %v919_v36  ;;  %v980_v44 = vmul.f32 %v1673_v42, %v2095_v37  ;;  %v1020_v22 = vpop.permute.xlu0 %1019 }
 0x218   : > { %v1675_v32 = vpop.eup %1674 }
 0x219   : > { %v1677_v46 = vpop.eup %1676  ;;  %v981_v25 = vmul.f32 %v1675_v32, %v2101_v45 }
 0x21a   : > { %v1679_v7 = vpop.eup %1678  ;;  %v979_v53 = vmul.f32 %v1677_v46, %v2089_v30 }
 0x21b   : > { %v1681_v0 = vpop.eup %1680  ;;  %v982_v50 = vmul.f32 %v1679_v7, %v2109_v47 }
 0x21c   : > { %v1683_v51 = vpop.eup %1682  ;;  %v977_v17 = vmul.f32 %v1681_v0, %v2086_v28  ;;  %v997_v19 = vpack.c.bf16 %v981_v25, %v979_v53 }
 0x21d   : > { %v1685_v43 = vpop.eup %1684  ;;  %v998_v6 = vpack.c.bf16 %v982_v50, %v980_v44  ;;  %v974_v45 = vmul.f32 %v1683_v51, %v2080_v14 }
 0x21e   : > { %v1687_v55 = vpop.eup %1686  ;;  %v975_v37 = vmul.f32 %v1685_v43, %v2092_v35 }
 0x21f   : > { %v1689_v23 = vpop.eup %1688  ;;  %1087 = vmatprep.subr.bf16.mxu0 %v998_v6  ;;  %v972_v30 = vmul.f32 %v1687_v55, %v2078_v13  ;;  %v1015_v6 = vpop.permute.xlu1 %1014 }
 0x220   : > { %v1691_v26 = vpop.eup %1690  ;;  %1088 = vmatpush1.bf16.msra.mxu0 %v997_v19  ;;  %v973_v8 = vmul.f32 %v1689_v23, %v2097_v39  ;;  %v995_v34 = vpack.c.bf16 %v977_v17, %v975_v37 }
 0x221   : > { %v1693_v47 = vpop.eup %1692  ;;  %1089 = vmatprep.subr.bf16.mxu0 %v996_v18  ;;  %v970_v28 = vmul.f32 %v1691_v26, %v2103_v20  ;;  %v994_v57 = vpack.c.bf16 %v974_v45, %v972_v30  ;;  %v1568_v20 = vld [vmem:[%s2247_s5] sm:$0xff]   ;;  %v1010_v26 = vpop.permute.xlu0 %1009 }
 0x222   : > { %v1695_v27 = vpop.eup %1694  ;;  %v971_v14 = vmul.f32 %v1693_v47, %v2105_v52  ;;  %v1569_v52 = vld [vmem:[%s2247_s5 + $0x8] sm:$0xff]  }
 0x223   : > { %v1697_v56 = vpop.eup %1696  ;;  %v968_v59 = vmul.f32 %v1695_v27, %v2111_v38  ;;  %v1570_v38 = vld [vmem:[%s2247_s5 + $0x10] sm:$0xff]  }
 0x224   : > { %1090 = vmatpush1.bf16.msra.mxu0 %v995_v34  ;;  %v1699_v58 = vpop.eup %1698  ;;  %v969_v35 = vmul.f32 %v1697_v56, %v2113_v48  ;;  %v993_v60 = vpack.c.bf16 %v973_v8, %v971_v14  ;;  %v1571_v48 = vld [vmem:[%s2247_s5 + $0x18] sm:$0xff]  }
 0x225   : > { %1091 = vmatprep.subr.bf16.mxu0 %v994_v57  ;;  %v992_v13 = vpack.c.bf16 %v970_v28, %v968_v59  ;;  %v967_v61 = vmul.f32 %v1699_v58, %v2118_v24 }
 0x227   : > { %v991_v39 = vpack.c.bf16 %v969_v35, %v967_v61 }
 0x228   : > { %1092 = vmatpush1.bf16.msra.mxu0 %v993_v60 }
 0x229   : > { %1093 = vmatprep.subr.bf16.mxu0 %v992_v13 }
 0x22c   : > { %1094 = vmatpush1.bf16.msra.mxu0 %v991_v39 }
 0x22f   : > { %1508 = vmatmul.mubr.msk.bf16.vlgmr.msra.gmra.mxu0 %vm785_vm2, %v1568_v20 }
 0x230   : > { %1121 = vmatprep.mubr.bf16.mxu0 %v1798_v11 }
 0x237   : > { %1509 = vmatmul.mubr.msk.bf16.gmra.mxu0 %vm785_vm2, %v1569_v52 }
 0x238   : > { %1131 = vmatprep.mubr.bf16.mxu0 %v1798_v11 }
 0x23f   : > { %1510 = vmatmul.mubr.msk.bf16.gmra.mxu0 %vm785_vm2, %v1570_v38 }
 0x240   : > { %1141 = vmatprep.mubr.bf16.mxu0 %v1798_v11 }
 0x247   : > { %1511 = vmatmul.mubr.msk.bf16.gmra.mxu0 %vm785_vm2, %v1571_v48 }
 0x2ef   : > { %v1113_v24 = vpop.f32.mrf.mxu0 }
 0x2f0   : > { %v2201_v57 = vadd.f32 %v1113_v24, %v1010_v26 }
 0x2f1   : > { %v1115_v62 = vpop.f32.mrf.mxu0 }
 0x2f2   : > { %v2194_v27 = vadd.f32 %v1115_v62, %v1010_v26  ;;  %v1512_v35 = vmul.f32 -1.442695, %v2201_v57 }
 0x2f3   : > { %v1117_v63 = vpop.f32.mrf.mxu0 }
 0x2f4   : > { %v2196_v8 = vadd.f32 %v1117_v63, %v1015_v6  ;;  %v1513_v58 = vmul.f32 -1.442695, %v2194_v27 }
 0x2f5   : > { %v1119_v1 = vpop.f32.mrf.mxu0 }
 0x2f6   : > { %v2186_v23 = vadd.f32 %v1119_v1, %v1015_v6  ;;  %v1514_v59 = vmul.f32 -1.442695, %v2196_v8 }
 0x2f7   : > { %v1123_v3 = vpop.f32.mrf.mxu0 }
 0x2f8   : > { %v2188_v45 = vadd.f32 %v1123_v3, %v1020_v22  ;;  %v1515_v28 = vmul.f32 -1.442695, %v2186_v23 }
 0x2f9   : > { %v1125_v5 = vpop.f32.mrf.mxu0 }
 0x2fa   : > { %v2161_v33 = vadd.f32 %v1125_v5, %v1020_v22  ;;  %v1516_v14 = vmul.f32 -1.442695, %v2188_v45 }
 0x2fb   : > { %v1127_v9 = vpop.f32.mrf.mxu0 }
 0x2fc   : > { %v1517_v46 = vmul.f32 -1.442695, %v2161_v33  ;;  %v2180_v43 = vadd.f32 %v1127_v9, %v1025_v31 }
 0x2fd   : > { %v1129_v12 = vpop.f32.mrf.mxu0 }
 0x2fe   : > { %v2163_v36 = vadd.f32 %v1129_v12, %v1025_v31  ;;  %v1518_v34 = vmul.f32 -1.442695, %v2180_v43 }
 0x2ff   : > { %v1133_v16 = vpop.f32.mrf.mxu0 }
 0x300   : > { %v1519_v49 = vmul.f32 -1.442695, %v2163_v36  ;;  %v2175_v50 = vadd.f32 %v1133_v16, %v1030_v10 }
 0x301   : > { %v1135_v11 = vpop.f32.mrf.mxu0 }
 0x302   : > { %v2159_v21 = vadd.f32 %v1135_v11, %v1030_v10  ;;  %v1520_v37 = vmul.f32 -1.442695, %v2175_v50 }
 0x303   : > { %v1137_v29 = vpop.f32.mrf.mxu0 }
 0x304   : > { %v1521_v41 = vmul.f32 -1.442695, %v2159_v21  ;;  %v2169_v7 = vadd.f32 %v1137_v29, %v1035_v15 }
 0x305   : > { %v1139_v40 = vpop.f32.mrf.mxu0 }
 0x306   : > { %v2166_v42 = vadd.f32 %v1139_v40, %v1035_v15  ;;  %1700 = vpow2.f32 %v1521_v41  ;;  %v1522_v55 = vmul.f32 -1.442695, %v2169_v7 }
 0x307   : > { %v1143_v32 = vpop.f32.mrf.mxu0 }
 0x308   : > { %v1523_v25 = vmul.f32 -1.442695, %v2166_v42  ;;  %v2172_v0 = vadd.f32 %v1143_v32, %v1040_v2 }
 0x309   : > { %v1145_v44 = vpop.f32.mrf.mxu0 }
 0x30a   : > { %v1524_v51 = vmul.f32 -1.442695, %v2172_v0  ;;  %v2178_v53 = vadd.f32 %v1145_v44, %v1040_v2  ;;  %1702 = vpow2.f32 %v1523_v25 }
 0x30b   : > { %v1147_v54 = vpop.f32.mrf.mxu0  ;;  %1704 = vpow2.f32 %v1517_v46 }
 0x30c   : > { %v1525_v17 = vmul.f32 -1.442695, %v2178_v53  ;;  %v2184_v19 = vadd.f32 %v1147_v54, %v1045_v4  ;;  %1706 = vpow2.f32 %v1519_v49 }
 0x30d   : > { %v1149_v18 = vpop.f32.mrf.mxu0  ;;  %1708 = vpow2.f32 %v1524_v51 }
 0x30e   : > { %v1526_v47 = vmul.f32 -1.442695, %v2184_v19  ;;  %v2192_v30 = vadd.f32 %v1149_v18, %v1045_v4  ;;  %1710 = vpow2.f32 %v1525_v17 }
 0x30f   : > { %1712 = vpow2.f32 %v1522_v55 }
 0x310   : > { %v1527_v56 = vmul.f32 -1.442695, %v2192_v30  ;;  %1714 = vpow2.f32 %v1526_v47 }
 0x311   : > { %1716 = vpow2.f32 %v1520_v37 }
 0x312   : > { %1718 = vpow2.f32 %v1527_v56 }
 0x313   : > { %1720 = vpow2.f32 %v1518_v34  ;;  %v1701_v60 = vpop.eup %1700 }
 0x314   : > { %1722 = vpow2.f32 %v1515_v28  ;;  %v1209_v20 = vadd.f32 1.0, %v1701_v60 }
 0x315   : > { %1724 = vpow2.f32 %v1516_v14 }
 0x316   : > { %1726 = vpow2.f32 %v1513_v58 }
 0x317   : > { %v1703_v13 = vpop.eup %1702  ;;  %1728 = vpow2.f32 %v1514_v59 }
 0x318   : > { %v1705_v61 = vpop.eup %1704  ;;  %1730 = vpow2.f32 %v1512_v35  ;;  %v1211_v38 = vadd.f32 1.0, %v1703_v13 }
 0x319   : > { %v1707_v39 = vpop.eup %1706  ;;  %1732 = vrcp.f32 %v1209_v20  ;;  %v1205_v22 = vadd.f32 1.0, %v1705_v61 }
 0x31a   : > { %v1709_v52 = vpop.eup %1708  ;;  %1734 = vrcp.f32 %v1211_v38  ;;  %v1207_v10 = vadd.f32 1.0, %v1707_v39 }
 0x31b   : > { %v1711_v48 = vpop.eup %1710  ;;  %v1212_v1 = vadd.f32 1.0, %v1709_v52 }
 0x31c   : > { %v1713_v24 = vpop.eup %1712  ;;  %v1213_v62 = vadd.f32 1.0, %v1711_v48 }
 0x31d   : > { %v1715_v63 = vpop.eup %1714  ;;  %v1210_v5 = vadd.f32 1.0, %v1713_v24 }
 0x31e   : > { %v1717_v2 = vpop.eup %1716  ;;  %v1214_v3 = vadd.f32 1.0, %v1715_v63  ;;  %1736 = vrcp.f32 %v1213_v62 }
 0x31f   : > { %v1719_v4 = vpop.eup %1718  ;;  %v1208_v16 = vadd.f32 1.0, %v1717_v2 }
 0x320   : > { %v1721_v9 = vpop.eup %1720  ;;  %1738 = vrcp.f32 %v1214_v3  ;;  %v1215_v12 = vadd.f32 1.0, %v1719_v4 }
 0x321   : > { %v1723_v15 = vpop.eup %1722  ;;  %1740 = vrcp.f32 %v1212_v1  ;;  %v1206_v31 = vadd.f32 1.0, %v1721_v9 }
 0x322   : > { %v1725_v11 = vpop.eup %1724  ;;  %1742 = vrcp.f32 %v1215_v12  ;;  %v1203_v41 = vadd.f32 1.0, %v1723_v15 }
 0x323   : > { %v1727_v29 = vpop.eup %1726  ;;  %1744 = vrcp.f32 %v1210_v5  ;;  %v1204_v32 = vadd.f32 1.0, %v1725_v11 }
 0x324   : > { %v1729_v40 = vpop.eup %1728  ;;  %1746 = vrcp.f32 %v1207_v10  ;;  %v1201_v25 = vadd.f32 1.0, %v1727_v29 }
 0x325   : > { %1748 = vrcp.f32 %v1208_v16  ;;  %v1731_v46 = vpop.eup %1730  ;;  %v1202_v49 = vadd.f32 1.0, %v1729_v40 }
 0x326   : > { %1750 = vrcp.f32 %v1205_v22  ;;  %v1200_v44 = vadd.f32 1.0, %v1731_v46  ;;  %v1733_v51 = vpop.eup %1732 }
 0x327   : > { %1752 = vrcp.f32 %v1206_v31  ;;  %v1735_v54 = vpop.eup %1734  ;;  %v1257_v59 = vmul.f32 %v1733_v51, %v2159_v21 }
 0x328   : > { %1754 = vrcp.f32 %v1203_v41  ;;  %v1259_v47 = vmul.f32 %v1735_v54, %v2166_v42 }
 0x329   : > { %1756 = vrcp.f32 %v1204_v32 }
 0x32a   : > { %1758 = vrcp.f32 %v1201_v25  ;;  %v1270_v42 = vpack.c.bf16 %v1259_v47, %v1257_v59 }
 0x32b   : > { %1760 = vrcp.f32 %v1202_v49  ;;  %v1737_v6 = vpop.eup %1736 }
 0x32c   : > { %1762 = vrcp.f32 %v1200_v44  ;;  %v1261_v34 = vmul.f32 %v1737_v6, %v2178_v53 }
 0x32d   : > { %v1739_v55 = vpop.eup %1738 }
 0x32e   : > { %v1741_v17 = vpop.eup %1740  ;;  %v1262_v26 = vmul.f32 %v1739_v55, %v2184_v19 }
 0x32f   : > { %v1743_v18 = vpop.eup %1742  ;;  %v1260_v14 = vmul.f32 %v1741_v17, %v2172_v0 }
 0x330   : > { %v1745_v37 = vpop.eup %1744  ;;  %v1263_v56 = vmul.f32 %v1743_v18, %v2192_v30 }
 0x331   : > { %v1747_v28 = vpop.eup %1746  ;;  %v1258_v13 = vmul.f32 %v1745_v37, %v2169_v7  ;;  %v1271_v61 = vpack.c.bf16 %v1262_v26, %v1260_v14 }
 0x332   : > { %v1749_v58 = vpop.eup %1748  ;;  %v1272_v35 = vpack.c.bf16 %v1263_v56, %v1261_v34  ;;  %v1255_v19 = vmul.f32 %v1747_v28, %v2163_v36 }
 0x333   : > { %v1751_v60 = vpop.eup %1750  ;;  %v1256_v53 = vmul.f32 %v1749_v58, %v2175_v50 }
 0x334   : > { %v1753_v39 = vpop.eup %1752  ;;  %1290 = vmatprep.subr.bf16.mxu1 %v1272_v35  ;;  %v1253_v0 = vmul.f32 %v1751_v60, %v2161_v33 }
 0x335   : > { %v1755_v20 = vpop.eup %1754  ;;  %1291 = vmatpush1.bf16.msra.mxu1 %v1271_v61  ;;  %v1254_v21 = vmul.f32 %v1753_v39, %v2180_v43  ;;  %v1269_v38 = vpack.c.bf16 %v1258_v13, %v1256_v53 }
 0x336   : > { %v1757_v30 = vpop.eup %1756  ;;  %1292 = vmatprep.subr.bf16.mxu1 %v1270_v42  ;;  %v1251_v7 = vmul.f32 %v1755_v20, %v2186_v23  ;;  %v1268_v24 = vpack.c.bf16 %v1255_v19, %v1253_v0  ;;  %v1264_v23 = vld [vmem:[%s2249_s7] sm:$0x3] }
 0x337   : > { %v1759_v52 = vpop.eup %1758  ;;  %v1252_v36 = vmul.f32 %v1757_v30, %v2188_v45  ;;  %v1772_v45 = vld [vmem:[%s1875_s16] sm:$0x77] }
 0x338   : > { %v1761_v48 = vpop.eup %1760  ;;  %v1249_v50 = vmul.f32 %v1759_v52, %v2194_v27  ;;  %v1323_v3 = vmax.f32 %v1772_v45, 1e-07  ;;  %v1277_v27 = vpop.permute.xlu0 %1276 }
 0x339   : > { %1293 = vmatpush1.bf16.msra.mxu1 %v1269_v38  ;;  %v1763_v62 = vpop.eup %1762  ;;  %v1250_v63 = vmul.f32 %v1761_v48, %v2196_v8  ;;  %v1267_v33 = vpack.c.bf16 %v1254_v21, %v1252_v36 }
 0x33a   : > { %1294 = vmatprep.subr.bf16.mxu1 %v1268_v24  ;;  %v1266_v1 = vpack.c.bf16 %v1251_v7, %v1249_v50  ;;  %v1248_v2 = vmul.f32 %v1763_v62, %v2201_v57  ;;  %v1324_v5 = vmin.f32 %v1323_v3, 0.9999999 }
 0x33c   : > { %v1265_v43 = vpack.c.bf16 %v1250_v63, %v1248_v2  ;;  %1764 = vrcp.f32 %v1324_v5  ;;  %v1325_v29 = vsub.f32 1.0, %v1324_v5 }
 0x33d   : > { %1295 = vmatpush1.bf16.msra.mxu1 %v1267_v33 }
 0x33e   : > { %1296 = vmatprep.subr.bf16.mxu1 %v1266_v1 }
 0x341   : > { %1297 = vmatpush1.bf16.msra.mxu1 %v1265_v43 }
 0x344   : > { %1528 = vmatmul.mubr.msk.bf16.vlgmr.msra.gmra.mxu1 %vm785_vm2, %v1264_v23 }
 0x349   : > { %v1765_v31 = vpop.eup %1764 }
 0x34a   : > { %v1327_v41 = vmul.f32 %v1765_v31, %v1325_v29 }
 0x404   : > { %v1316_v4 = vpop.f32.mrf.mxu1 }
 0x405   : > { %v1317_v8 = vadd.f32 %v1316_v4, %v1277_v27 }
 0x406   : > { %v1318_v9 = vpop.f32.mrf.mxu1 }
 0x407   : > { %v1328_v10 = vsub.f32 0.0, %v1317_v8  ;;  %v1319_v12 = vadd.f32 %v1318_v9, %v1277_v27 }
 0x408   : > { %v1320_v57 = vpop.f32.mrf.mxu1 }
 0x409   : > { %v1330_v15 = vmul.f32 1.442695, %v1328_v10  ;;  %v1329_v16 = vsub.f32 0.0, %v1319_v12 }
 0x40a   : > { %v1321_v11 = vpop.f32.mrf.mxu1 }
 0x40b   : > { %v1332_v22 = vmul.f32 1.442695, %v1329_v16  ;;  %1766 = vpow2.f32 %v1330_v15 }
 0x40d   : > { %1768 = vpow2.f32 %v1332_v22 }
 0x418   : > { %v1767_v40 = vpop.eup %1766 }
 0x41a   : > { %v1769_v32 = vpop.eup %1768 }
 0x41b   : > { %v1336_v46 = vcombine.low %v1767_v40, %v1769_v32 }
 0x41d   : > { %v1338_v25 = vmul.f32 %v1336_v46, %v1327_v41 }
 0x41f   : > { %v1339_v49 = vadd.f32 1.0, %v1338_v25 }
 0x421   : > { %1770 = vrcp.f32 %v1339_v49 }
 0x42e   : > { %v1771_v44 = vpop.eup %1770 }
 0x42f   : > { %1341 = vst [vmem:[%s392_s27] sm:$0x77] %v1771_v44 }
 0x430 PF: > { %s19_s11 = sadd.s32 1, %s1795_s11   ;;  %s2252_s30 = smov %s1791_s10 }
 0x431   : > { %p16_p5 = scmp.ge.s32.totalorder %s19_s11, 4   ;;  %s2253_s10 = smov %s2255_s12 }
 0x433   :  { %18 = sbr.rel (!%p16_p5) target bundleno = 2 (0x2), region = 89 }

</bundles_post_ra>
